<compile_context>
chip_gen: v5e
topology: v5e:2x2
jax: 0.10.0
libtpu: 0.0.40
codegen_flags: <defaults>
</compile_context>

<pallas_src>
import jax
import jax.numpy as jnp
from jax.experimental import pallas as pl
from jax.experimental.pallas import tpu as pltpu

N_EMBD = 384
HEAD_S = 64                  # head_size
QKV = 3 * HEAD_S             # fused q|k|v output width = 192


def attn_kernel(x_ref, wqkv_ref, o_ref):
    Bt, T, C = x_ref.shape
    x = x_ref[...]                                        # (Bt, T, C) f32

    # ---- fused QKV projection: one (Bt*T, C) x (C, 3D) bf16 matmul ----
    h = x.reshape(Bt * T, C).astype(jnp.bfloat16)
    qkv = jnp.dot(h, wqkv_ref[...], preferred_element_type=jnp.float32)
    qkv = qkv.reshape(Bt, T, QKV)
    q = qkv[:, :, 0 * HEAD_S:1 * HEAD_S].astype(jnp.bfloat16)
    k = qkv[:, :, 1 * HEAD_S:2 * HEAD_S].astype(jnp.bfloat16)
    v = qkv[:, :, 2 * HEAD_S:3 * HEAD_S].astype(jnp.bfloat16)

    # ---- scaled causal attention scores (per packed sequence) ----
    scale = float(HEAD_S) ** -0.5
    logits = jnp.einsum('btd,bsd->bts', q, k,
                        preferred_element_type=jnp.float32) * scale

    row = jax.lax.broadcasted_iota(jnp.int32, (T, T), 0)
    col = jax.lax.broadcasted_iota(jnp.int32, (T, T), 1)
    causal = (row >= col)[None, :, :]                     # (1, T, T)
    logits = jnp.where(causal, logits, -1e30)             # finite; no inf-inf NaN

    # ---- softmax (f32), reciprocal on the EUP ----
    logits = logits - jnp.max(logits, axis=-1, keepdims=True)
    p = jnp.exp(logits)
    inv = pl.reciprocal(jnp.sum(p, axis=-1, keepdims=True), approx=True)
    p = p * inv
    # TODO(synk): training-mode dropout (p=0.2) on attention weights is omitted
    # (eval-mode identity).

    out = jnp.einsum('bts,bsd->btd', p.astype(jnp.bfloat16), v,
                     preferred_element_type=jnp.float32)
    o_ref[...] = out.astype(o_ref.dtype)


def single_head_self_attention(x, wqkv, *, block_batch=None):
    B, T, C = x.shape
    assert C == N_EMBD and wqkv.shape == (C, QKV)

    if block_batch is None:
        # Pack sequences per grid step to fill the MXU M dimension, but keep
        # the grid length a multiple of 2 so both v7x TensorCores get work.
        block_batch = 1
        for bt in (8, 4, 2):
            if B % bt == 0 and (B // bt) % 2 == 0:
                block_batch = bt
                break
    assert B % block_batch == 0
    grid = (B // block_batch,)

    return pl.pallas_call(
        attn_kernel,
        out_shape=jax.ShapeDtypeStruct((B, T, HEAD_S), x.dtype),
        grid_spec=pltpu.PrefetchScalarGridSpec(
            num_scalar_prefetch=0,
            grid=grid,
            in_specs=[
                pl.BlockSpec((block_batch, T, C), lambda b: (b, 0, 0)),   # x tile
                pl.BlockSpec((C, QKV), lambda b: (0, 0)),                 # weight (grid-invariant)
            ],
            out_specs=pl.BlockSpec((block_batch, T, HEAD_S),
                                   lambda b: (b, 0, 0)),
        ),
        compiler_params=pltpu.CompilerParams(
            dimension_semantics=("parallel",),
        ),
    )(x, wqkv)


def reference(x, wqkv):
    """Pure-JAX f32 reference of the PyTorch forward (eval mode)."""
    w = wqkv.astype(jnp.float32)
    wq, wk, wv = w[:, :HEAD_S], w[:, HEAD_S:2 * HEAD_S], w[:, 2 * HEAD_S:]
    hp = jax.lax.Precision.HIGHEST
    q = jnp.einsum('btc,cd->btd', x, wq, precision=hp)
    k = jnp.einsum('btc,cd->btd', x, wk, precision=hp)
    v = jnp.einsum('btc,cd->btd', x, wv, precision=hp)
    T = x.shape[1]
    logits = jnp.einsum('btd,bsd->bts', q, k, precision=hp) * (HEAD_S ** -0.5)
    mask = jnp.tril(jnp.ones((T, T), dtype=bool))
    logits = jnp.where(mask, logits, -jnp.inf)
    p = jax.nn.softmax(logits, axis=-1)
    return jnp.einsum('bts,bsd->btd', p, v, precision=hp)


if __name__ == "__main__":
    key = jax.random.PRNGKey(0)
    kx, kq, kk, kv = jax.random.split(key, 4)

    B, T = 2, 16                              # block_size = T = 16
    x = jax.random.normal(kx, (B, T, N_EMBD), jnp.float32)

    s = 0.02
    wq = s * jax.random.normal(kq, (N_EMBD, HEAD_S), jnp.float32)
    wk = s * jax.random.normal(kk, (N_EMBD, HEAD_S), jnp.float32)
    wv = s * jax.random.normal(kv, (N_EMBD, HEAD_S), jnp.float32)
    # fused q|k|v weight, stored in bf16 to halve weight HBM traffic
    wqkv = jnp.concatenate([wq, wk, wv], axis=1).astype(jnp.bfloat16)

    out = jax.block_until_ready(single_head_self_attention(x, wqkv))
    ref = reference(x, wqkv)

    assert out.shape == (B, T, HEAD_S)
    assert jnp.allclose(out, ref, rtol=2e-2, atol=2e-2), "mismatch vs reference"

    print("KERNEL_OK")
</pallas_src>

<mosaic_0001>
module attributes {stable_mosaic.version = 11 : i64} {
  func.func @attn_kernel(%arg0: i32, %arg1: memref<1x16x384xf32, #tpu.memory_space<vmem>>, %arg2: memref<384x192xbf16, #tpu.memory_space<vmem>>, %arg3: memref<1x16x64xf32, #tpu.memory_space<vmem>>) attributes {dimension_semantics = [#tpu.dimension_semantics<parallel>], iteration_bounds = array<i64: 2>, scalar_prefetch = 0 : i64, scratch_operands = 0 : i64, tpu.core_type = #tpu.core_type<tc>, window_params = [{transform_indices = @transform_0, window_bounds = array<i64: 1, 16, 384>}, {pipeline_mode = #tpu.pipeline_mode<synchronous>, transform_indices = @transform_1, window_bounds = array<i64: 384, 192>}, {transform_indices = @transform_2, window_bounds = array<i64: 1, 16, 64>}]} {
    %c0 = arith.constant 0 : index
    %c0_0 = arith.constant 0 : index
    %c0_1 = arith.constant 0 : index
    %0 = vector.load %arg1[%c0, %c0_0, %c0_1] : memref<1x16x384xf32, #tpu.memory_space<vmem>>, vector<1x16x384xf32>
    %1 = vector.shape_cast %0 : vector<1x16x384xf32> to vector<16x384xf32>
    %2 = arith.truncf %1 : vector<16x384xf32> to vector<16x384xbf16>
    %c0_2 = arith.constant 0 : index
    %c0_3 = arith.constant 0 : index
    %3 = vector.load %arg2[%c0_2, %c0_3] : memref<384x192xbf16, #tpu.memory_space<vmem>>, vector<384x192xbf16>
    %cst = arith.constant dense<0.000000e+00> : vector<16x192xf32>
    %4 = tpu.matmul %2, %3, %cst {dimension_numbers = #tpu.dot_dimension_numbers<[1], [0], [0], [1], [0, 0, 1, 1], [], []>} : vector<16x384xbf16>, vector<384x192xbf16>, vector<16x192xf32> -> vector<16x192xf32>
    %5 = vector.shape_cast %4 : vector<16x192xf32> to vector<1x16x192xf32>
    %6 = vector.extract_strided_slice %5 {offsets = [0, 0, 0], sizes = [1, 16, 64], strides = [1, 1, 1]} : vector<1x16x192xf32> to vector<1x16x64xf32>
    %7 = arith.truncf %6 : vector<1x16x64xf32> to vector<1x16x64xbf16>
    %8 = vector.extract_strided_slice %5 {offsets = [0, 0, 64], sizes = [1, 16, 64], strides = [1, 1, 1]} : vector<1x16x192xf32> to vector<1x16x64xf32>
    %9 = arith.truncf %8 : vector<1x16x64xf32> to vector<1x16x64xbf16>
    %10 = vector.extract_strided_slice %5 {offsets = [0, 0, 128], sizes = [1, 16, 64], strides = [1, 1, 1]} : vector<1x16x192xf32> to vector<1x16x64xf32>
    %11 = arith.truncf %10 : vector<1x16x64xf32> to vector<1x16x64xbf16>
    "tpu.trace_start"() <{level = 10 : i32, message = "btd,bsd->bts"}> : () -> ()
    %cst_4 = arith.constant dense<0.000000e+00> : vector<1x16x16xf32>
    %12 = tpu.matmul %7, %9, %cst_4 {dimension_numbers = #tpu.dot_dimension_numbers<[2], [2], [1], [1], [0, 0, 0, 1, 1, 1], [0], [0]>} : vector<1x16x64xbf16>, vector<1x16x64xbf16>, vector<1x16x16xf32> -> vector<1x16x16xf32>
    "tpu.trace_stop"() : () -> ()
    %cst_5 = arith.constant 1.250000e-01 : f32
    %13 = vector.broadcast %cst_5 : f32 to vector<1x16x16xf32>
    %14 = arith.mulf %12, %13 : vector<1x16x16xf32>
    %15 = tpu.iota {dimensions = array<i32: 0>} : vector<16x16xi32>
    %16 = tpu.iota {dimensions = array<i32: 1>} : vector<16x16xi32>
    %17 = arith.cmpi sge, %15, %16 : vector<16x16xi32>
    %18 = vector.shape_cast %17 : vector<16x16xi1> to vector<1x16x16xi1>
    %cst_6 = arith.constant -1.000000e+30 : f32
    %19 = vector.broadcast %cst_6 : f32 to vector<1x16x16xf32>
    %20 = arith.select %18, %14, %19 : vector<1x16x16xi1>, vector<1x16x16xf32>
    %cst_7 = arith.constant dense<0xFF800000> : vector<1x16xf32>
    %21 = vector.multi_reduction <maximumf>, %20, %cst_7 [2] : vector<1x16x16xf32> to vector<1x16xf32>
    %22 = vector.shape_cast %21 : vector<1x16xf32> to vector<1x16x1xf32>
    %23 = vector.broadcast %22 : vector<1x16x1xf32> to vector<1x16x16xf32>
    %24 = arith.subf %20, %23 : vector<1x16x16xf32>
    %25 = math.exp %24 : vector<1x16x16xf32>
    %cst_8 = arith.constant dense<0.000000e+00> : vector<1x16xf32>
    %26 = vector.multi_reduction <add>, %25, %cst_8 [2] : vector<1x16x16xf32> to vector<1x16xf32>
    %27 = vector.shape_cast %26 : vector<1x16xf32> to vector<1x16x1xf32>
    %28 = tpu.reciprocal %27 {approx = true} : vector<1x16x1xf32> -> vector<1x16x1xf32>
    %29 = vector.broadcast %28 : vector<1x16x1xf32> to vector<1x16x16xf32>
    %30 = arith.mulf %25, %29 : vector<1x16x16xf32>
    %31 = arith.truncf %30 : vector<1x16x16xf32> to vector<1x16x16xbf16>
    "tpu.trace_start"() <{level = 10 : i32, message = "bts,bsd->btd"}> : () -> ()
    %cst_9 = arith.constant dense<0.000000e+00> : vector<1x16x64xf32>
    %32 = tpu.matmul %31, %11, %cst_9 {dimension_numbers = #tpu.dot_dimension_numbers<[2], [1], [1], [2], [0, 0, 0, 1, 1, 2], [0], [0]>} : vector<1x16x16xbf16>, vector<1x16x64xbf16>, vector<1x16x64xf32> -> vector<1x16x64xf32>
    "tpu.trace_stop"() : () -> ()
    %c0_10 = arith.constant 0 : index
    %c0_11 = arith.constant 0 : index
    %c0_12 = arith.constant 0 : index
    %33 = vector.load %arg3[%c0_10, %c0_11, %c0_12] : memref<1x16x64xf32, #tpu.memory_space<vmem>>, vector<1x16x64xf32>
    tpu.vector_store %arg3[%c0_10, %c0_11, %c0_12], %32 {strides = array<i32>} : memref<1x16x64xf32, #tpu.memory_space<vmem>>, vector<1x16x64xf32>,
    return
  }
  func.func @transform_0(%arg0: i32) -> (i32, i32, i32) {
    %c0_i32 = arith.constant 0 : i32
    %c0_i32_0 = arith.constant 0 : i32
    %c0_i32_1 = arith.constant 0 : i32
    return %arg0, %c0_i32, %c0_i32_0 : i32, i32, i32
  }
  func.func @transform_1(%arg0: i32) -> (i32, i32) {
    %c0_i32 = arith.constant 0 : i32
    %c0_i32_0 = arith.constant 0 : i32
    %c0_i32_1 = arith.constant 0 : i32
    return %c0_i32, %c0_i32_0 : i32, i32
  }
  func.func @transform_2(%arg0: i32) -> (i32, i32, i32) {
    %c0_i32 = arith.constant 0 : i32
    %c0_i32_0 = arith.constant 0 : i32
    %c0_i32_1 = arith.constant 0 : i32
    return %arg0, %c0_i32, %c0_i32_0 : i32, i32, i32
  }
}

</mosaic_0001>

<bundles_post_ra>
// kernel: tpu_custom_call.1
= control target key start
LH: loop header
LB: loop body
LE: loop exit
PB: predicated region body
PF: predicated region fallthrough
CT: control target
= control target key end

     0   :  { %7 = vsyncpa [#allocation3], 0  ;;  %s1481_s0 = inlined_call_operand.vmem [shape: f32[2,16,384], index: 0, kind: input, shape index: {}]   ;;  %s1482_s1 = inlined_call_operand.vmem [shape: bf16[384,192], index: 1, kind: input, shape index: {}]   ;;  %s1483_s2 = inlined_call_operand.hbm [shape: f32[2,16,64], index: 2, kind: output, shape index: {}]  }
   0x1   :  { %9 = vsyncpa [#allocation3 + $0x1], 0  ;;  %s1087_s9 = smov 0   ;;  %s1089_s10 = smov 0  }
   0x2   :  { %s1091_s11 = smov 0   ;;  %s1093_s12 = smov 0  }
   0x3 LB: > { %s1108_s13 = sadd.s32 4294967295, %s1067_s12   ;;  %s700_s14 = sadd.s32 4294967294, %s1067_s12   ;;  %s1067_s12 = sphi %s1093_s12, %s1489_s12   ;;  %s1063_s11 = sphi %s1091_s11, %s1488_s11   ;;  %s1059_s10 = sphi %s1089_s10, %s1487_s10   ;;  %s1055_s9 = sphi %s1087_s9, %s1486_s9  }
   0x4   : > { %s1112_s15 = sadd.s32 1, %s1067_s12   ;;  %s69_s16 = sadd.s32 1, %s1063_s11 }
   0x5   : > { %s66_s17 = ssub.s32 %s1067_s12, %s1112_s15  ;;  %p79_p0 = scmp.ne.s32.totalorder %s1063_s11, %s1059_s10 }
   0x6   : > { %p67_p1 = scmp.eq.s32.totalorder %s66_s17, 0  ;;  %p80_p2 = scmp.eq.s32.totalorder %s1108_s13, 1 }
   0x7   : > { %p85_p3 = scmp.ne.s32.totalorder %s1059_s10, %s1055_s9  ;;  %p86_p4 = scmp.eq.s32.totalorder %s700_s14, 1 }
   0x8   : > { %s1123_s18 = scalar_select %p67_p1, %s1063_s11, %s69_s16  }
   0x9   : > { %p1125_p5 = por %p80_p2, %p79_p0  ;;  %p1129_p6 = por %p86_p4, %p85_p3 }
   0xa   : > { %p703_p7 = scmp.ge.s32.totalorder %s1067_s12, 1  ;;  %p115_p8 = scmp.lt.s32.totalorder %s1067_s12, 3 }
   0xc   : > { %p116_p9 = pnand %p703_p7, %p115_p8 }
   0xd   : > { %p137_p10 = scmp.lt.s32.totalorder (!%p116_p9), %s1108_s13, 1  ;;  %s134_s29 = sand.u32 (!%p116_p9), 1, %s1059_s10  }
   0xe   : > { %119 = sbr.rel (%p116_p9) target bundleno = 873 (0x369), region = 28  ;;  %s704_s30 = sshll.u32 (!%p116_p9), %s134_s29, 4 }
   0xf   : > { %s953_s3 = sshll.u32 (!%p116_p9), %s1108_s13, 4  ;;  %s136_s7 = scalar_lea.vmem (!%p116_p9), [#allocation2], %s704_s30 }
  0x10   : > { %s634_s6 = scalar_lea.hbm (!%p116_p9), %s1483_s2, %s953_s3  ;;  %s623_s16 = scalar_lea.sflag (!%p116_p9), [#allocation3], %s134_s29 }
  0x11   : > { %s637_s14 = sshll.u32 (!%p116_p9), %s634_s6, 4  ;;  %s1025_s23 = scalar_lea.hbm (!%p116_p9), %s1483_s2, 32  ;;  %s638_s14 = int_to_ptr.hbm [resolvable:$true] %s637_s14 }
  0x13   : > { %v764_v0 = vld [vmem:[%s1482_s1 + $0x70] sm:$0xf]  ;;  %v920_v1 = vld [vmem:[%s1482_s1 + $0x74] sm:$0xf0]  ;;  %v756_v9 = vld [vmem:[%s1482_s1 + $0x60] sm:$0xf] }
  0x14   : > { %v828_v2 = vld [vmem:[%s1482_s1 + $0xf0] sm:$0xf]  ;;  %v765_v3 = vor.u32 %v920_v1, %v764_v0  ;;  %v936_v4 = vld [vmem:[%s1482_s1 + $0xf4] sm:$0xf0]  ;;  %v918_v10 = vld [vmem:[%s1482_s1 + $0x64] sm:$0xf0] }
  0x15   : > { %v892_v5 = vld [vmem:[%s1482_s1 + $0x170] sm:$0xf]  ;;  %v952_v6 = vld [vmem:[%s1482_s1 + $0x174] sm:$0xf0]  ;;  %v829_v7 = vor.u32 %v936_v4, %v828_v2  ;;  %v820_v11 = vld [vmem:[%s1482_s1 + $0xe0] sm:$0xf]  ;;  %v757_v12 = vor.u32 %v918_v10, %v756_v9 }
  0x16   : > { %v893_v8 = vor.u32 %v952_v6, %v892_v5  ;;  %440 = vmatpush.bf16.msra.mxu0 %v765_v3  ;;  %v934_v13 = vld [vmem:[%s1482_s1 + $0xe4] sm:$0xf0]  ;;  %v884_v14 = vld [vmem:[%s1482_s1 + $0x160] sm:$0xf]  ;;  %v748_v18 = vld [vmem:[%s1482_s1 + $0x50] sm:$0xf] }
  0x17   : > { %v950_v15 = vld [vmem:[%s1482_s1 + $0x164] sm:$0xf0]  ;;  %454 = vmatpush.bf16.msra.mxu1 %v829_v7  ;;  %v821_v16 = vor.u32 %v934_v13, %v820_v11  ;;  %v916_v19 = vld [vmem:[%s1482_s1 + $0x54] sm:$0xf0]  ;;  %v812_v20 = vld [vmem:[%s1482_s1 + $0xd0] sm:$0xf] }
  0x18   : > { %468 = vmatpush.bf16.msra.mxu2 %v893_v8  ;;  %v885_v17 = vor.u32 %v950_v15, %v884_v14  ;;  %v932_v21 = vld [vmem:[%s1482_s1 + $0xd4] sm:$0xf0]  ;;  %v876_v22 = vld [vmem:[%s1482_s1 + $0x150] sm:$0xf]  ;;  %v749_v24 = vor.u32 %v916_v19, %v748_v18  ;;  %v740_v27 = vld [vmem:[%s1482_s1 + $0x40] sm:$0xf] }
  0x19   : > { %v948_v23 = vld [vmem:[%s1482_s1 + $0x154] sm:$0xf0]  ;;  %v813_v25 = vor.u32 %v932_v21, %v812_v20  ;;  %v914_v28 = vld [vmem:[%s1482_s1 + $0x44] sm:$0xf0]  ;;  %v804_v29 = vld [vmem:[%s1482_s1 + $0xc0] sm:$0xf] }
  0x1a   : > { %441 = vmatpush.bf16.msra.mxu0 %v757_v12  ;;  %v877_v26 = vor.u32 %v948_v23, %v876_v22  ;;  %v930_v30 = vld [vmem:[%s1482_s1 + $0xc4] sm:$0xf0]  ;;  %v868_v31 = vld [vmem:[%s1482_s1 + $0x140] sm:$0xf]  ;;  %v741_v33 = vor.u32 %v914_v28, %v740_v27  ;;  %v732_v36 = vld [vmem:[%s1482_s1 + $0x30] sm:$0xf] }
  0x1b   : > { %455 = vmatpush.bf16.msra.mxu1 %v821_v16  ;;  %v946_v32 = vld [vmem:[%s1482_s1 + $0x144] sm:$0xf0]  ;;  %v805_v34 = vor.u32 %v930_v30, %v804_v29  ;;  %v912_v37 = vld [vmem:[%s1482_s1 + $0x34] sm:$0xf0]  ;;  %v796_v38 = vld [vmem:[%s1482_s1 + $0xb0] sm:$0xf] }
  0x1c   : > { %469 = vmatpush.bf16.msra.mxu2 %v885_v17  ;;  %v869_v35 = vor.u32 %v946_v32, %v868_v31  ;;  %v928_v39 = vld [vmem:[%s1482_s1 + $0xb4] sm:$0xf0]  ;;  %v860_v40 = vld [vmem:[%s1482_s1 + $0x130] sm:$0xf]  ;;  %v733_v42 = vor.u32 %v912_v37, %v732_v36  ;;  %v724_v43 = vld [vmem:[%s1482_s1 + $0x20] sm:$0xf] }
  0x1d   : > { %v944_v41 = vld [vmem:[%s1482_s1 + $0x134] sm:$0xf0]  ;;  %v797_v44 = vor.u32 %v928_v39, %v796_v38  ;;  %v910_v46 = vld [vmem:[%s1482_s1 + $0x24] sm:$0xf0]  ;;  %v788_v47 = vld [vmem:[%s1482_s1 + $0xa0] sm:$0xf] }
  0x1e   : > { %442 = vmatpush.bf16.msra.mxu0 %v749_v24  ;;  %v861_v45 = vor.u32 %v944_v41, %v860_v40  ;;  %v926_v48 = vld [vmem:[%s1482_s1 + $0xa4] sm:$0xf0]  ;;  %v852_v49 = vld [vmem:[%s1482_s1 + $0x120] sm:$0xf]  ;;  %s138_s8 = scalar_select %p137_p10, %s1108_s13, 1  ;;  %v725_v51 = vor.u32 %v910_v46, %v724_v43  ;;  %vm535_vm0 = vcmask 523264  }
  0x1f   : > { %456 = vmatpush.bf16.msra.mxu1 %v813_v25  ;;  %v942_v50 = vld [vmem:[%s1482_s1 + $0x124] sm:$0xf0]  ;;  %v716_v52 = vld [vmem:[%s1482_s1 + $0x10] sm:$0xf]  ;;  %v789_v53 = vor.u32 %v926_v48, %v788_v47  ;;  %v908_v55 = vld [vmem:[%s1482_s1 + $0x14] sm:$0xf0] }
  0x20   : > { %470 = vmatpush.bf16.msra.mxu2 %v877_v26  ;;  %v853_v54 = vor.u32 %v942_v50, %v852_v49  ;;  %v780_v56 = vld [vmem:[%s1482_s1 + $0x90] sm:$0xf]  ;;  %s954_s24 = smul.u32 48, %s138_s8  ;;  %v924_v57 = vld [vmem:[%s1482_s1 + $0x94] sm:$0xf0]  ;;  %v717_v60 = vor.u32 %v908_v55, %v716_v52  ;;  %vm567_vm2 = vcmask 130048  }
  0x21   : > { %v844_v58 = vld [vmem:[%s1482_s1 + $0x110] sm:$0xf]  ;;  %v940_v59 = vld [vmem:[%s1482_s1 + $0x114] sm:$0xf0]  ;;  %v781_v61 = vor.u32 %v924_v57, %v780_v56  ;;  %v708_v63 = vld [vmem:[%s1482_s1] sm:$0xf] }
  0x22   : > { %443 = vmatpush.bf16.msra.mxu0 %v741_v33  ;;  %v845_v62 = vor.u32 %v940_v59, %v844_v58  ;;  %v906_v0 = vld [vmem:[%s1482_s1 + $0x4] sm:$0xf0]  ;;  %v772_v1 = vld [vmem:[%s1482_s1 + $0x80] sm:$0xf]  ;;  %s141_s17 = scalar_lea.vmem %s1481_s0, %s954_s24  ;;  %s1069_s24 = smov 64  }
  0x23   : > { %457 = vmatpush.bf16.msra.mxu1 %v805_v34  ;;  %v922_v2 = vld [vmem:[%s1482_s1 + $0x84] sm:$0xf0]  ;;  %v836_v3 = vld [vmem:[%s1482_s1 + $0x100] sm:$0xf]  ;;  %v709_v5 = vor.u32 %v906_v0, %v708_v63  ;;  %v146_v7 = vld [vmem:[%s141_s17 + $0x18] sm:$0xff]  ;;  %s635_s8 = sshll.u32 %s136_s7, 4  ;;  %s636_s8 = int_to_ptr.vmem [resolvable:$true] %s635_s8 }
  0x24   : > { %471 = vmatpush.bf16.msra.mxu2 %v869_v35  ;;  %v938_v4 = vld [vmem:[%s1482_s1 + $0x104] sm:$0xf0]  ;;  %v143_v6 = vld [vmem:[%s141_s17] sm:$0xff]  ;;  %v773_v9 = vor.u32 %v922_v2, %v772_v1  ;;  %v145_v12 = vld [vmem:[%s141_s17 + $0x10] sm:$0xff]  ;;  %v558_v1 = vlaneseq }
  0x25   : > { %v144_v8 = vld [vmem:[%s141_s17 + $0x8] sm:$0xff]  ;;  %v837_v10 = vor.u32 %v938_v4, %v836_v3  ;;  %v147_v11 = vld [vmem:[%s141_s17 + $0x20] sm:$0xff]  ;;  %v1284_v14 = vpack.c.bf16 %v146_v7, %v143_v6  ;;  %v919_v34 = vld [vmem:[%s1482_s1 + $0x74] sm:$0xf] }
  0x26   : > { %444 = vmatpush.bf16.msra.mxu0 %v733_v42  ;;  %v148_v13 = vld [vmem:[%s141_s17 + $0x28] sm:$0xff]  ;;  %v1286_v15 = vpack.c.bf16 %v147_v11, %v144_v8  ;;  %v766_v35 = vld [vmem:[%s1482_s1 + $0x78] sm:$0xf0]  ;;  %v917_v36 = vld [vmem:[%s1482_s1 + $0x64] sm:$0xf]  ;;  %v559_v11 = vshrl.u32 %v558_v1, 7 }
  0x27   : > { %458 = vmatpush.bf16.msra.mxu1 %v797_v44  ;;  %v1288_v16 = vpack.c.bf16 %v148_v13, %v145_v12  ;;  %v769_v37 = vor.u32 %v919_v34, %v766_v35  ;;  %v758_v38 = vld [vmem:[%s1482_s1 + $0x68] sm:$0xf0]  ;;  %v935_v39 = vld [vmem:[%s1482_s1 + $0xf4] sm:$0xf]  ;;  %v830_v40 = vld [vmem:[%s1482_s1 + $0xf8] sm:$0xf0] }
  0x28   : > { %472 = vmatpush.bf16.msra.mxu2 %v861_v45  ;;  %v833_v41 = vor.u32 %v935_v39, %v830_v40  ;;  %v951_v42 = vld [vmem:[%s1482_s1 + $0x174] sm:$0xf]  ;;  %v761_v43 = vor.u32 %v917_v36, %v758_v38  ;;  %v894_v44 = vld [vmem:[%s1482_s1 + $0x178] sm:$0xf0]  ;;  %v933_v45 = vld [vmem:[%s1482_s1 + $0xe4] sm:$0xf] }
  0x29   : > { %482 = vmatpush.bf16.msra.mxu3 %v769_v37  ;;  %v822_v46 = vld [vmem:[%s1482_s1 + $0xe8] sm:$0xf0]  ;;  %v915_v47 = vld [vmem:[%s1482_s1 + $0x54] sm:$0xf]  ;;  %v750_v48 = vld [vmem:[%s1482_s1 + $0x58] sm:$0xf0]  ;;  %v897_v49 = vor.u32 %v951_v42, %v894_v44 }
  0x2a   : > { %445 = vmatpush.bf16.msra.mxu0 %v725_v51  ;;  %v825_v50 = vor.u32 %v933_v45, %v822_v46  ;;  %v949_v51 = vld [vmem:[%s1482_s1 + $0x164] sm:$0xf]  ;;  %v886_v52 = vld [vmem:[%s1482_s1 + $0x168] sm:$0xf0]  ;;  %v753_v56 = vor.u32 %v915_v47, %v750_v48  ;;  %v947_v57 = vld [vmem:[%s1482_s1 + $0x154] sm:$0xf] }
  0x2b   : > { %459 = vmatpush.bf16.msra.mxu1 %v789_v53  ;;  %v931_v53 = vld [vmem:[%s1482_s1 + $0xd4] sm:$0xf]  ;;  %v889_v55 = vor.u32 %v949_v51, %v886_v52  ;;  %v878_v58 = vld [vmem:[%s1482_s1 + $0x158] sm:$0xf0]  ;;  %v913_v59 = vld [vmem:[%s1482_s1 + $0x44] sm:$0xf] }
  0x2c   : > { %473 = vmatpush.bf16.msra.mxu2 %v853_v54  ;;  %v814_v54 = vld [vmem:[%s1482_s1 + $0xd8] sm:$0xf0]  ;;  %v806_v63 = vld [vmem:[%s1482_s1 + $0xc8] sm:$0xf0]  ;;  %v881_v0 = vor.u32 %v947_v57, %v878_v58  ;;  %v945_v3 = vld [vmem:[%s1482_s1 + $0x144] sm:$0xf] }
  0x2d   : > { %483 = vmatpush.bf16.msra.mxu3 %v761_v43  ;;  %v870_v4 = vld [vmem:[%s1482_s1 + $0x148] sm:$0xf0]  ;;  %v734_v6 = vld [vmem:[%s1482_s1 + $0x38] sm:$0xf0]  ;;  %v927_v8 = vld [vmem:[%s1482_s1 + $0xb4] sm:$0xf] }
  0x2e   : > { %446 = vmatpush.bf16.msra.mxu0 %v717_v60  ;;  %v742_v60 = vld [vmem:[%s1482_s1 + $0x48] sm:$0xf0]  ;;  %v562_v12 = vand.u32 127, %v558_v1  ;;  %v782_v34 = vld [vmem:[%s1482_s1 + $0x98] sm:$0xf0]  ;;  %v560_v38 = vadd.s32 8, %v559_v11 }
  0x2f   : > { %460 = vmatpush.bf16.msra.mxu1 %v781_v61  ;;  %v817_v61 = vor.u32 %v931_v53, %v814_v54  ;;  %v745_v2 = vor.u32 %v913_v59, %v742_v60  ;;  %v939_v40 = vld [vmem:[%s1482_s1 + $0x114] sm:$0xf]  ;;  %v905_v42 = vld [vmem:[%s1482_s1 + $0x4] sm:$0xf]  ;;  %v710_v43 = vld [vmem:[%s1482_s1 + $0x8] sm:$0xf0] }
  0x30   : > { %474 = vmatpush.bf16.msra.mxu2 %v845_v62  ;;  %v929_v62 = vld [vmem:[%s1482_s1 + $0xc4] sm:$0xf]  ;;  %vm563_vm1 = vcmp.ge.s32.totalorder %v559_v11, %v562_v12  ;;  %v774_v46 = vld [vmem:[%s1482_s1 + $0x88] sm:$0xf0]  ;;  %vm564_vm3 = vcmp.ge.s32.totalorder %v560_v38, %v562_v12  ;;  %s1019_s17 = sshra.s32 %s638_s14, 4  ;;  %s1020_s17 = int_to_ptr.hbm [resolvable:$true] %s1019_s17 }
  0x31   : > { %484 = vmatpush.bf16.msra.mxu3 %v753_v56  ;;  %v809_v7 = vor.u32 %v929_v62, %v806_v63  ;;  %v921_v45 = vld [vmem:[%s1482_s1 + $0x84] sm:$0xf]  ;;  %v838_v51 = vld [vmem:[%s1482_s1 + $0x108] sm:$0xf0]  ;;  %s1021_s13 = scalar_lea.hbm %s1020_s17, 16  ;;  %p1026_p0 = scmp.lt.s32.totalorder %s1020_s17, %s1483_s2 }
  0x32   : > { %447 = vmatpush.bf16.msra.mxu0 %v709_v5  ;;  %v911_v5 = vld [vmem:[%s1482_s1 + $0x34] sm:$0xf]  ;;  %v777_v53 = vor.u32 %v921_v45, %v774_v46  ;;  %p1022_p11 = scmp.ne.s32.totalorder %s1020_s17, %s1021_s13  ;;  %p1027_p1 = scmp.lt.s32.totalorder %s1025_s23, %s1021_s13 }
  0x33   : > { %461 = vmatpush.bf16.msra.mxu1 %v773_v9  ;;  %v798_v9 = vld [vmem:[%s1482_s1 + $0xb8] sm:$0xf0]  ;;  %v737_v13 = vor.u32 %v911_v5, %v734_v6 }
  0x34   : > { %475 = vmatpush.bf16.msra.mxu2 %v837_v10  ;;  %v873_v10 = vor.u32 %v945_v3, %v870_v4  ;;  %p1023_p12 = pnand %p1022_p11, %p1125_p5  ;;  %p1028_p2 = por %p1027_p1, %p1026_p0 }
  0x35   : > { %448 = vmatmul.bf16.vlgmr.msra.gmra.mxu0 %v1284_v14  ;;  %485 = vmatpush.bf16.msra.mxu3 %v745_v2 }
  0x36   : > { %462 = vmatmul.bf16.vlgmr.msra.gmra.mxu1 %v1286_v15  ;;  %496 = vmatpush.bf16.msrb.mxu0 %v833_v41  ;;  %v846_v41 = vld [vmem:[%s1482_s1 + $0x118] sm:$0xf0]  ;;  %p1024_p13 = pneg %p1023_p12 }
  0x37   : > { %476 = vmatmul.bf16.vlgmr.msra.gmra.mxu2 %v1288_v16  ;;  %510 = vmatpush.bf16.msrb.mxu1 %v897_v49  ;;  %v849_v47 = vor.u32 %v939_v40, %v846_v41  ;;  %v713_v49 = vor.u32 %v905_v42, %v710_v43 }
  0x38   : > { %p1029_p3 = pnand %p1028_p2, %p1024_p13 }
  0x39   : > { %486 = vmatpush.bf16.msra.mxu3 %v737_v13 }
  0x3a   : > { %497 = vmatpush.bf16.msrb.mxu0 %v825_v50  ;;  %v937_v50 = vld [vmem:[%s1482_s1 + $0x104] sm:$0xf] }
  0x3b   : > { %511 = vmatpush.bf16.msrb.mxu1 %v889_v55  ;;  %v841_v55 = vor.u32 %v937_v50, %v838_v51 }
  0x3e   : > { %498 = vmatpush.bf16.msrb.mxu0 %v817_v61 }
  0x3f   : > { %512 = vmatpush.bf16.msrb.mxu1 %v881_v0 }
  0x42   : > { %499 = vmatpush.bf16.msrb.mxu0 %v809_v7 }
  0x43   : > { %513 = vmatpush.bf16.msrb.mxu1 %v873_v10 }
  0xb2   : > { %v449_v17 = vpop.f32.mrf.mxu0 }
  0xb3   : > { %v463_v18 = vpop.f32.mrf.mxu1 }
  0xb4   : > { %v464_v20 = vadd.f32 %v463_v18, %v449_v17  ;;  %v943_v17 = vld [vmem:[%s1482_s1 + $0x134] sm:$0xf]  ;;  %v862_v18 = vld [vmem:[%s1482_s1 + $0x138] sm:$0xf0] }
  0xba   : > { %v477_v19 = vpop.f32.mrf.mxu2  ;;  %v451_v21 = vpop.f32.mrf.mxu0 }
  0xbb   : > { %v465_v22 = vpop.f32.mrf.mxu1  ;;  %v478_v23 = vadd.f32 %v477_v19, %v464_v20  ;;  %v909_v19 = vld [vmem:[%s1482_s1 + $0x24] sm:$0xf]  ;;  %v726_v20 = vld [vmem:[%s1482_s1 + $0x28] sm:$0xf0] }
  0xbc   : > { %v466_v24 = vadd.f32 %v465_v22, %v451_v21  ;;  %v801_v21 = vor.u32 %v927_v8, %v798_v9  ;;  %v925_v22 = vld [vmem:[%s1482_s1 + $0xa4] sm:$0xf] }
  0xbd   : > { %v524_v26 = vpack.c.bf16 %v478_v23, %v478_v23  ;;  %v790_v23 = vld [vmem:[%s1482_s1 + $0xa8] sm:$0xf0] }
  0xbe   : > { %500 = vmatpush.bf16.msrb.mxu0 %v801_v21 }
  0xbf   : > { %v530_v29 = vunpack.c.l.b16 %v524_v26  ;;  %v729_v26 = vor.u32 %v909_v19, %v726_v20 }
  0xc1   : > { %487 = vmatpush.bf16.msra.mxu3 %v729_v26 }
  0xc2   : > { %v479_v25 = vpop.f32.mrf.mxu2 }
  0xc3   : > { %v480_v27 = vadd.f32 %v479_v25, %v466_v24  ;;  %v865_v24 = vor.u32 %v943_v17, %v862_v18 }
  0xc5   : > { %v525_v28 = vpack.c.bf16 %v480_v27, %v480_v27  ;;  %v941_v27 = vld [vmem:[%s1482_s1 + $0x124] sm:$0xf]  ;;  %514 = vmatpush.bf16.msrb.mxu1 %v865_v24 }
  0xc7   : > { %v531_v30 = vunpack.c.l.b16 %v525_v28  ;;  %v854_v28 = vld [vmem:[%s1482_s1 + $0x128] sm:$0xf0] }
  0xc8   : > { %v857_v36 = vor.u32 %v941_v27, %v854_v28 }
  0xc9   : > { %v532_v31 = vpack.c.b16 %v531_v30, %v530_v29  ;;  %v907_v30 = vld [vmem:[%s1482_s1 + $0x14] sm:$0xf] }
  0xca   : > { %515 = vmatpush.bf16.msrb.mxu1 %v857_v36 }
  0xcb   : > { %533 = vrot.lane.b32.xlu0 %v532_v31, %s1069_s24 }
  0xce   : > { %516 = vmatpush.bf16.msrb.mxu1 %v849_v47 }
  0xd2   : > { %517 = vmatpush.bf16.msrb.mxu1 %v841_v55 }
  0xd5   : > { %518 = vmatmul.bf16.vlgmr.msrb.gmra.mxu1 %v1288_v16 }
 0x13d   : > { %v534_v32 = vpop.permute.xlu0 %533 }
 0x13e   : > { %v540_v33 = vsel %vm535_vm0, %v534_v32, 0  ;;  %v793_v32 = vor.u32 %v925_v22, %v790_v23 }
 0x13f   : > { %549 = vmatpush.bf16.xpose.msrb.mxu2 %v540_v33  ;;  %v923_v33 = vld [vmem:[%s1482_s1 + $0x94] sm:$0xf] }
 0x140   : > { %501 = vmatpush.bf16.msrb.mxu0 %v793_v32  ;;  %v785_v44 = vor.u32 %v923_v33, %v782_v34 }
 0x144   : > { %502 = vmatpush.bf16.msrb.mxu0 %v785_v44 }
 0x146   : > { %898 = vmatmul.msk.bf16.vlgmr.msrb.gmra.mxu2 %vm535_vm0, %v532_v31  ;;  %v718_v31 = vld [vmem:[%s1482_s1 + $0x18] sm:$0xf0] }
 0x147   : > { %v721_v39 = vor.u32 %v907_v30, %v718_v31 }
 0x148   : > { %503 = vmatpush.bf16.msrb.mxu0 %v777_v53 }
 0x149   : > { %488 = vmatpush.bf16.msra.mxu3 %v721_v39 }
 0x14b   : > { %504 = vmatmul.bf16.vlgmr.msrb.gmra.mxu0 %v1286_v15 }
 0x14d   : > { %489 = vmatpush.bf16.msra.mxu3 %v713_v49 }
 0x150   : > { %490 = vmatmul.bf16.vlgmr.msra.gmra.mxu3 %v1284_v14 }
 0x152   : > { %v519_v3 = vpop.f32.mrf.mxu1 }
 0x15a   : > { %v521_v7 = vpop.f32.mrf.mxu1 }
 0x1c8   : > { %v505_v15 = vpop.f32.mrf.mxu0 }
 0x1c9   : > { %v551_v25 = vpop.f32.mrf.mxu2 }
 0x1ca   : > { %v556_v29 = vmul.f32 0.125, %v551_v25 }
 0x1cc   : > { %v565_v35 = vsel %vm563_vm1, %v556_v29, -1e+30 }
 0x1cd   : > { %v568_v37 = vsel %vm567_vm2, %v565_v35, -inf }
 0x1ce   : > { %569 = vmax.xlane.f32.xlu0 %v568_v37 }
 0x1d0   : > { %v507_v4 = vpop.f32.mrf.mxu0 }
 0x1d1   : > { %v553_v48 = vpop.f32.mrf.mxu2 }
 0x1d2   : > { %v557_v52 = vmul.f32 0.125, %v553_v48 }
 0x1d3   : > { %v491_v2 = vpop.f32.mrf.mxu3 }
 0x1d4   : > { %v566_v54 = vsel %vm564_vm3, %v557_v52, -1e+30  ;;  %v506_v5 = vadd.f32 %v505_v15, %v491_v2 }
 0x1d5   : > { %v571_v56 = vsel %vm567_vm2, %v566_v54, -inf }
 0x1d6   : > { %572 = vmax.xlane.f32.xlu1 %v571_v56  ;;  %v520_v8 = vadd.f32 %v519_v3, %v506_v5 }
 0x1d8   : > { %v526_v10 = vpack.c.bf16 %v520_v8, %v520_v8 }
 0x1da   : > { %v599_v12 = vunpack.c.l.b16 %v526_v10 }
 0x1db   : > { %v493_v16 = vpop.f32.mrf.mxu3 }
 0x1dc   : > { %v508_v6 = vadd.f32 %v507_v4, %v493_v16 }
 0x1de   : > { %v522_v9 = vadd.f32 %v521_v7, %v508_v6 }
 0x1e0   : > { %v527_v11 = vpack.c.bf16 %v522_v9, %v522_v9 }
 0x1e2   : > { %v600_v13 = vunpack.c.l.b16 %v527_v11 }
 0x1e4   : > { %v601_v17 = vpack.c.b16 %v600_v13, %v599_v12 }
 0x1e6   : > { %613 = vmatpush.bf16.msrb.mxu3 %v601_v17 }
 0x241   : > { %v570_v57 = vpop.xlane.xlu0 %569 }
 0x242   : > { %v574_v58 = vsub.f32 %v565_v35, %v570_v57 }
 0x244   : > { %v576_v59 = vmul.f32 1.442695, %v574_v58 }
 0x246   : > { %997 = vpow2.f32 %v576_v59 }
 0x249   : > { %v573_v60 = vpop.xlane.xlu1 %572 }
 0x24a   : > { %v575_v61 = vsub.f32 %v566_v54, %v573_v60 }
 0x24c   : > { %v998_v62 = vpop.eup %997  ;;  %v578_v63 = vmul.f32 1.442695, %v575_v61 }
 0x24d   : > { %v580_v0 = vsel %vm567_vm2, %v998_v62, 0.0 }
 0x24e   : > { %999 = vpow2.f32 %v578_v63  ;;  %581 = vadd.xlane.f32.xlu1 %v580_v0 }
 0x254   : > { %v1000_v1 = vpop.eup %999 }
 0x255   : > { %v583_v14 = vsel %vm567_vm2, %v1000_v1, 0.0 }
 0x256   : > { %584 = vadd.xlane.f32.xlu2 %v583_v14 }
 0x2c1   : > { %v582_v18 = vpop.xlane.xlu1 %581 }
 0x2c2   : > { %1001 = vrcp.f32 %v582_v18 }
 0x2c8   : > { %v1002_v20 = vpop.eup %1001 }
 0x2c9   : > { %v585_v19 = vpop.xlane.xlu2 %584  ;;  %v588_v21 = vmul.f32 %v1002_v20, %v998_v62 }
 0x2ca   : > { %1003 = vrcp.f32 %v585_v19 }
 0x2cb   : > { %v590_v23 = vpack.c.bf16 %v588_v21, %v588_v21 }
 0x2cd   : > { %v594_v26 = vunpack.c.l.b16 %v590_v23 }
 0x2d0   : > { %v1004_v22 = vpop.eup %1003 }
 0x2d1   : > { %v589_v24 = vmul.f32 %v1004_v22, %v1000_v1 }
 0x2d3   : > { %v591_v25 = vpack.c.bf16 %v589_v24, %v589_v24 }
 0x2d5   : > { %v595_v27 = vunpack.c.l.b16 %v591_v25 }
 0x2d7   : > { %v596_v28 = vpack.c.b16 %v595_v27, %v594_v26 }
 0x2d9   : > { %899 = vmatmul.msk.bf16.vlgmr.msrb.gmra.mxu3 %vm567_vm2, %v596_v28 }
 0x35c   : > { %v615_v29 = vpop.f32.mrf.mxu3 }
 0x35d   : > { %620 = vst.msk [vmem:[%s136_s7] sm:$0xff] %vm535_vm0, %v615_v29 }
 0x364   : > { %v617_v30 = vpop.f32.mrf.mxu3 }
 0x365   : > { %621 = vst.msk [vmem:[%s136_s7 + $0x8] sm:$0xff] %vm535_vm0, %v617_v30 }
 0x366   : > { %1032 = shalt.err (!%p1029_p3)
}
 0x367   : > { %s1070_s27 = smov 128   ;;  %s1071_s24 = smov 8  }
 0x368   : > { %955 = dma.vmem_to_hbm [thread:$0]  (%p1125_p5), %s636_s8, 256, %s638_s14, %s623_s16, %s1070_s27, %s1070_s27, %s1071_s24  }
 0x369 PF: > { %p961_p4 = scmp.ge.s32.totalorder %s1067_s12, 2  ;;  %s652_s28 = sand.u32 1, %s1055_s9  }
 0x36a   : > { %s653_s29 = scalar_lea.sflag [#allocation3], %s652_s28 }
 0x36b   : > { %p958_p7 = pnand %p961_p4, %p1129_p6 }
 0x36d   : > { %p959_p8 = pneg %p958_p7 }
 0x36f   : > { %1050 = dma.done.wait (%p959_p8), %s653_s29, 256  }
 0x370   : > { %1052 = vsyncadd (%p959_p8), %s653_s29, 4294967040  ;;  %p12_p9 = scmp.ge.s32.totalorder %s1112_s15, 4   ;;  %s1486_s9 = smov %s1059_s10 }
 0x371   : > { %s1487_s10 = smov %s1063_s11  ;;  %s1488_s11 = smov %s1123_s18 }
 0x372   : > { %s1489_s12 = smov %s1112_s15  ;;  %14 = sbr.rel (!%p12_p9) target bundleno = 3 (0x3), region = 63 }
 0x377   :  { %659 = vsyncpa [#allocation3], 1 }
 0x378   :  { %661 = vsyncpa [#allocation3 + $0x1], 1 }

</bundles_post_ra>
